<compile_context>
chip_gen: v6e
topology: v6e:2x2x1
jax: 0.10.0
libtpu: 0.0.40
codegen_flags: <defaults>
</compile_context>

<pallas_src>
import numpy as np
import jax
import jax.numpy as jnp
from jax.experimental import pallas as pl
from jax.experimental.pallas import tpu as pltpu

B = 2
X_DIM = 4
TRAJ_LEN_ARG = 15          # Critic(x_dim, traj_len=15)
T = TRAJ_LEN_ARG + 1       # 16 (module does traj_len += 1)
L_COND, L_TRAJ, L_GOAL = 1, T, 1
L_IN = L_COND + L_TRAJ + L_GOAL          # 18  (conv length after the two cats)

# (Cin, Cout, kernel_size, Lin, Lout)
BLOCKS = [(X_DIM, 64, 6, L_IN, T // 2),
          (64, 64, 4, T // 2, T // 4),
          (64, 128, 4, T // 4, T // 8)]
N1 = 64 * (T // 2)                       # 512
N2 = 64 * (T // 4)                       # 256
N3 = 128 * (T // 8)                      # 256
ADV_IN = 64 * ((T + 1) // 4)             # 256 == N3
PAD_IN = 128                             # padded contraction dim for block 1
LRELU_SLOPE = 0.2
LN_EPS = 1e-5


# --------------------------------- kernel ------------------------------------
def critic_kernel(x_ref,
                  m1_ref, b1_ref,
                  m2_hbm, b2_ref,
                  m3_hbm, b3_ref,
                  wa_ref, c_ref,
                  out_ref,
                  m2_vmem, m3_vmem, sem):
    # Prefetch block-2/3 dense matrices behind block-1 compute (manual DMA from HBM).
    cp2 = pltpu.make_async_copy(m2_hbm, m2_vmem, sem.at[0])
    cp3 = pltpu.make_async_copy(m3_hbm, m3_vmem, sem.at[1])
    cp2.start()
    cp3.start()

    def lrelu_ln(y):
        # LeakyReLU(0.2)
        y = jnp.maximum(y, LRELU_SLOPE * y)
        # TODO(synk): Dropout(0.2) is identity (eval-mode semantics only).
        # Fused single-pass LayerNorm over all non-batch elements (= whole row).
        # Affine (gamma/beta) is folded into the NEXT layer's matrix/bias.
        inv_n = 1.0 / float(y.shape[1])
        mu = jnp.sum(y, axis=1, keepdims=True) * inv_n
        ex2 = jnp.sum(y * y, axis=1, keepdims=True) * inv_n
        var = ex2 - mu * mu
        return (y - mu) * jax.lax.rsqrt(var + LN_EPS)

    # block 1: bf16 x bf16 matmul, f32 accumulation.
    x = x_ref[...].astype(jnp.bfloat16)
    h = jnp.dot(x, m1_ref[...], preferred_element_type=jnp.float32) + b1_ref[...]
    h = lrelu_ln(h)                                               # (B, N1)

    # block 2 (matrix already carries block-1 LN affine)
    cp2.wait()
    h = jnp.dot(h.astype(jnp.bfloat16), m2_vmem[...],
                preferred_element_type=jnp.float32) + b2_ref[...]
    h = lrelu_ln(h)                                               # (B, N2)

    # block 3 (matrix already carries block-2 LN affine)
    cp3.wait()
    h = jnp.dot(h.astype(jnp.bfloat16), m3_vmem[...],
                preferred_element_type=jnp.float32) + b3_ref[...]
    h = lrelu_ln(h)                                               # (B, N3)

    # adv_layer folded with block-3 LN affine: sum(h * w') + c, bias from SMEM.
    out_ref[...] = jnp.sum(h * wa_ref[...], axis=1, keepdims=True) + c_ref[0, 0]


# ------------------------ one-time host-side param prep -----------------------
def _conv_as_dense_matrix_np(w, lin, lout, stride=2, pad=1):
    """Fold Conv1d(stride, padding) into a dense (Cin*Lin, Cout*Lout) matrix
    acting on channel-major flattened (B, Cin*Lin) activations.  numpy, runs once."""
    cout, cin, K = w.shape
    m = np.zeros((cin, lin, cout, lout), np.float32)
    wf = np.asarray(w, np.float32)
    for o in range(lout):
        for k in range(K):
            p = o * stride + k - pad
            if 0 <= p < lin:
                m[:, p, :, o] = wf[:, :, k].T      # m[ci, p, co, o] = w[co, ci, k]
    return m.reshape(cin * lin, cout * lout)


def prepare_kernel_params(params):
    """Hoisted out of the per-call path: build folded/fused kernel operands once."""
    (w1, b1, g1, be1), (w2, b2, g2, be2), (w3, b3, g3, be3) = params["blocks"]
    wa, ba = params["adv"]
    (c1i, _, _, l1i, l1o), (_, _, _, l2i, l2o), (_, _, _, l3i, l3o) = BLOCKS

    M1 = _conv_as_dense_matrix_np(np.asarray(w1), l1i, l1o)      # (72,  N1)
    M2 = _conv_as_dense_matrix_np(np.asarray(w2), l2i, l2o)      # (N1, N2)
    M3 = _conv_as_dense_matrix_np(np.asarray(w3), l3i, l3o)      # (N2, N3)

    b1f = np.repeat(np.asarray(b1, np.float32), l1o)             # (N1,)
    b2f = np.repeat(np.asarray(b2, np.float32), l2o)             # (N2,)
    b3f = np.repeat(np.asarray(b3, np.float32), l3o)             # (N3,)
    g1f, be1f = [np.asarray(a, np.float32).reshape(-1) for a in (g1, be1)]
    g2f, be2f = [np.asarray(a, np.float32).reshape(-1) for a in (g2, be2)]
    g3f, be3f = [np.asarray(a, np.float32).reshape(-1) for a in (g3, be3)]
    waf = np.asarray(wa, np.float32).reshape(-1)                 # (ADV_IN,)
    baf = float(np.asarray(ba, np.float32).reshape(()))

    # Fold block-1 LN affine into block-2 conv, block-2 LN affine into block-3 conv.
    M2p = g1f[:, None] * M2
    b2p = b2f + be1f @ M2
    M3p = g2f[:, None] * M3
    b3p = b3f + be2f @ M3
    # Fold block-3 LN affine + adv Linear into one vector + scalar.
    wap = g3f * waf
    cap = float(np.dot(be3f, waf) + baf)

    # Pad M1 rows so the first contraction dim is a full 128-lane vreg.
    M1p = np.zeros((PAD_IN, N1), np.float32)
    M1p[: c1i * l1i, :] = M1

    return {
        "m1": jnp.asarray(M1p, dtype=jnp.bfloat16),
        "b1": jnp.asarray(b1f.reshape(1, -1), dtype=jnp.float32),
        "m2": jnp.asarray(M2p, dtype=jnp.bfloat16),
        "b2": jnp.asarray(b2p.reshape(1, -1), dtype=jnp.float32),
        "m3": jnp.asarray(M3p, dtype=jnp.bfloat16),
        "b3": jnp.asarray(b3p.reshape(1, -1), dtype=jnp.float32),
        "wa": jnp.asarray(wap.reshape(1, -1), dtype=jnp.float32),
        "c": jnp.asarray([[cap]], dtype=jnp.float32),
    }


# ------------------------------ wrapper (glue) --------------------------------
def critic_pallas(d_in_ncl, kp):
    """d_in_ncl: (B, C, L) exactly like the PyTorch Conv1d input."""
    bsz = d_in_ncl.shape[0]
    x_flat = d_in_ncl.reshape(bsz, -1).astype(jnp.float32)                 # (B, 72)
    x_pad = jnp.zeros((bsz, PAD_IN), jnp.float32).at[:, : x_flat.shape[1]].set(x_flat)

    vmem = pl.BlockSpec(memory_space=pltpu.MemorySpace.VMEM)
    smem = pl.BlockSpec(memory_space=pltpu.MemorySpace.SMEM)
    hbm = pl.BlockSpec(memory_space=pl.ANY)      # manual DMA targets

    # TODO(synk): for large batches add a batch grid axis with
    # dimension_semantics=("parallel",) so v7x shards across both TensorCores.
    return pl.pallas_call(
        critic_kernel,
        out_shape=jax.ShapeDtypeStruct((bsz, 1), jnp.float32),
        in_specs=[vmem,            # x
                  vmem, vmem,      # m1, b1
                  hbm, vmem,       # m2 (prefetched manually), b2
                  hbm, vmem,       # m3 (prefetched manually), b3
                  vmem, smem],     # wa, c (scalar)
        out_specs=vmem,
        scratch_shapes=[
            pltpu.VMEM((N1, N2), jnp.bfloat16),
            pltpu.VMEM((N2, N3), jnp.bfloat16),
            pltpu.SemaphoreType.DMA((2,)),
        ],
    )(x_pad, kp["m1"], kp["b1"], kp["m2"], kp["b2"], kp["m3"], kp["b3"],
      kp["wa"], kp["c"])


# ---------------- pure-JAX reference (mirrors the PyTorch module) -------------
def critic_ref(d_in_ncl, params):
    x = d_in_ncl.astype(jnp.float32)
    for (w, b, g, be) in params["blocks"]:
        y = jax.lax.conv_general_dilated(
            x, w.astype(jnp.float32), window_strides=(2,), padding=[(1, 1)],
            dimension_numbers=("NCH", "OIH", "NCH"))
        y = y + b[None, :, None]
        y = jnp.maximum(y, LRELU_SLOPE * y)
        mu = jnp.mean(y, axis=(1, 2), keepdims=True)
        var = jnp.mean((y - mu) ** 2, axis=(1, 2), keepdims=True)
        y = (y - mu) / jnp.sqrt(var + LN_EPS)
        x = y * g[None] + be[None]
    wa, ba = params["adv"]
    flat = x.reshape(x.shape[0], -1)
    return flat @ wa.T + ba[None, :]


def init_params(key):
    keys = jax.random.split(key, 16)
    ki = 0
    blocks = []
    for (cin, cout, K, lin, lout) in BLOCKS:
        w = 0.2 * jax.random.normal(keys[ki], (cout, cin, K), jnp.float32); ki += 1
        b = 0.1 * jax.random.normal(keys[ki], (cout,), jnp.float32); ki += 1
        g = 1.0 + 0.05 * jax.random.normal(keys[ki], (cout, lout), jnp.float32); ki += 1
        be = 0.05 * jax.random.normal(keys[ki], (cout, lout), jnp.float32); ki += 1
        blocks.append((w, b, g, be))
    wa = 0.1 * jax.random.normal(keys[ki], (1, ADV_IN), jnp.float32); ki += 1
    ba = jnp.zeros((1,), jnp.float32)
    return {"blocks": blocks, "adv": (wa, ba)}


if __name__ == "__main__":
    key = jax.random.PRNGKey(0)
    kparam_key, k1, k2, k3 = jax.random.split(key, 4)
    params = init_params(kparam_key)
    kparams = prepare_kernel_params(params)    # one-time host-side fold (numpy)

    trajs = jax.random.normal(k1, (B, X_DIM, L_TRAJ), jnp.float32)       # (2, 4, 16)
    conditions = jax.random.normal(k2, (B, X_DIM, L_COND), jnp.float32)  # (2, 4, 1)
    goals = jax.random.normal(k3, (B, X_DIM, L_GOAL), jnp.float32)       # (2, 4, 1)

    # forward(): torch.cat((conditions, trajs), 2) then cat with goals on dim 2
    d_in = jnp.concatenate([conditions, trajs], axis=2)
    d_in = jnp.concatenate([d_in, goals], axis=2)                        # (2, 4, 18)

    validity = critic_pallas(d_in, kparams)
    validity = jax.block_until_ready(validity)
    assert validity.shape == (B, 1), validity.shape

    ref = critic_ref(d_in, params)
    err = float(jnp.max(jnp.abs(validity - ref)))
    # Tolerance scaled for bf16-stored weights (f32 accumulation); pure f32 path is ~1e-5.
    tol = 5e-2 * max(1.0, float(jnp.max(jnp.abs(ref))))
    assert err < tol, f"max abs err {err} vs tol {tol}"
    print("KERNEL_OK")
</pallas_src>

<mosaic_0001>
module attributes {stable_mosaic.version = 11 : i64} {
  func.func @critic_kernel(%arg0: memref<2x128xf32, #tpu.memory_space<vmem>>, %arg1: memref<128x512xbf16, #tpu.memory_space<vmem>>, %arg2: memref<1x512xf32, #tpu.memory_space<vmem>>, %arg3: memref<512x256xbf16, #tpu.memory_space<any>>, %arg4: memref<1x256xf32, #tpu.memory_space<vmem>>, %arg5: memref<256x256xbf16, #tpu.memory_space<any>>, %arg6: memref<1x256xf32, #tpu.memory_space<vmem>>, %arg7: memref<1x256xf32, #tpu.memory_space<vmem>>, %arg8: memref<1x1xf32, #tpu.memory_space<smem>>, %arg9: memref<2x1xf32, #tpu.memory_space<vmem>>, %arg10: memref<512x256xbf16, #tpu.memory_space<vmem>>, %arg11: memref<256x256xbf16, #tpu.memory_space<vmem>>, %arg12: memref<2x!tpu.dma_semaphore, #tpu.memory_space<semaphore_mem>>) attributes {dimension_semantics = [], scalar_prefetch = 0 : i64, scratch_operands = 3 : i64, tpu.core_type = #tpu.core_type<tc>} {
    %c0_i32 = arith.constant 0 : i32
    %0 = tpu.memref_slice %arg12[%c0_i32] : memref<2x!tpu.dma_semaphore, #tpu.memory_space<semaphore_mem>> -> memref<1x!tpu.dma_semaphore, #tpu.memory_space<semaphore_mem>>
    %1 = tpu.memref_squeeze %0 : memref<1x!tpu.dma_semaphore, #tpu.memory_space<semaphore_mem>> -> memref<!tpu.dma_semaphore, #tpu.memory_space<semaphore_mem>>
    tpu.enqueue_dma source(%arg3 : memref<512x256xbf16, #tpu.memory_space<any>>) target(%arg10 : memref<512x256xbf16, #tpu.memory_space<vmem>>) target_semaphore(%1 : memref<!tpu.dma_semaphore, #tpu.memory_space<semaphore_mem>>)
    %c1_i32 = arith.constant 1 : i32
    %2 = tpu.memref_slice %arg12[%c1_i32] : memref<2x!tpu.dma_semaphore, #tpu.memory_space<semaphore_mem>> -> memref<1x!tpu.dma_semaphore, #tpu.memory_space<semaphore_mem>>
    %3 = tpu.memref_squeeze %2 : memref<1x!tpu.dma_semaphore, #tpu.memory_space<semaphore_mem>> -> memref<!tpu.dma_semaphore, #tpu.memory_space<semaphore_mem>>
    tpu.enqueue_dma source(%arg5 : memref<256x256xbf16, #tpu.memory_space<any>>) target(%arg11 : memref<256x256xbf16, #tpu.memory_space<vmem>>) target_semaphore(%3 : memref<!tpu.dma_semaphore, #tpu.memory_space<semaphore_mem>>)
    %c0 = arith.constant 0 : index
    %c0_0 = arith.constant 0 : index
    %4 = vector.load %arg0[%c0, %c0_0] : memref<2x128xf32, #tpu.memory_space<vmem>>, vector<2x128xf32>
    %5 = arith.truncf %4 : vector<2x128xf32> to vector<2x128xbf16>
    %c0_1 = arith.constant 0 : index
    %c0_2 = arith.constant 0 : index
    %6 = vector.load %arg1[%c0_1, %c0_2] : memref<128x512xbf16, #tpu.memory_space<vmem>>, vector<128x512xbf16>
    %cst = arith.constant dense<0.000000e+00> : vector<2x512xf32>
    %7 = tpu.matmul %5, %6, %cst {dimension_numbers = #tpu.dot_dimension_numbers<[1], [0], [0], [1], [0, 0, 1, 1], [], []>} : vector<2x128xbf16>, vector<128x512xbf16>, vector<2x512xf32> -> vector<2x512xf32>
    %c0_3 = arith.constant 0 : index
    %c0_4 = arith.constant 0 : index
    %8 = vector.load %arg2[%c0_3, %c0_4] : memref<1x512xf32, #tpu.memory_space<vmem>>, vector<1x512xf32>
    %9 = vector.broadcast %8 : vector<1x512xf32> to vector<2x512xf32>
    %10 = arith.addf %7, %9 : vector<2x512xf32>
    %cst_5 = arith.constant 2.000000e-01 : f32
    %11 = vector.broadcast %cst_5 : f32 to vector<2x512xf32>
    %12 = arith.mulf %11, %10 : vector<2x512xf32>
    %13 = arith.maximumf %10, %12 : vector<2x512xf32>
    %cst_6 = arith.constant dense<0.000000e+00> : vector<2xf32>
    %14 = vector.multi_reduction <add>, %13, %cst_6 [1] : vector<2x512xf32> to vector<2xf32>
    %15 = vector.shape_cast %14 : vector<2xf32> to vector<2x1xf32>
    %cst_7 = arith.constant 0.001953125 : f32
    %16 = vector.broadcast %cst_7 : f32 to vector<2x1xf32>
    %17 = arith.mulf %15, %16 : vector<2x1xf32>
    %18 = arith.mulf %13, %13 : vector<2x512xf32>
    %cst_8 = arith.constant dense<0.000000e+00> : vector<2xf32>
    %19 = vector.multi_reduction <add>, %18, %cst_8 [1] : vector<2x512xf32> to vector<2xf32>
    %20 = vector.shape_cast %19 : vector<2xf32> to vector<2x1xf32>
    %cst_9 = arith.constant 0.001953125 : f32
    %21 = vector.broadcast %cst_9 : f32 to vector<2x1xf32>
    %22 = arith.mulf %20, %21 : vector<2x1xf32>
    %23 = arith.mulf %17, %17 : vector<2x1xf32>
    %24 = arith.subf %22, %23 : vector<2x1xf32>
    %25 = vector.broadcast %17 : vector<2x1xf32> to vector<2x512xf32>
    %26 = arith.subf %13, %25 : vector<2x512xf32>
    %cst_10 = arith.constant 9.99999974E-6 : f32
    %27 = vector.broadcast %cst_10 : f32 to vector<2x1xf32>
    %28 = arith.addf %24, %27 : vector<2x1xf32>
    %29 = math.rsqrt %28 : vector<2x1xf32>
    %30 = vector.broadcast %29 : vector<2x1xf32> to vector<2x512xf32>
    %31 = arith.mulf %26, %30 : vector<2x512xf32>
    %c0_i32_11 = arith.constant 0 : i32
    %32 = tpu.memref_slice %arg12[%c0_i32_11] : memref<2x!tpu.dma_semaphore, #tpu.memory_space<semaphore_mem>> -> memref<1x!tpu.dma_semaphore, #tpu.memory_space<semaphore_mem>>
    %33 = tpu.memref_squeeze %32 : memref<1x!tpu.dma_semaphore, #tpu.memory_space<semaphore_mem>> -> memref<!tpu.dma_semaphore, #tpu.memory_space<semaphore_mem>>
    tpu.wait_dma2 semaphore(%33 : memref<!tpu.dma_semaphore, #tpu.memory_space<semaphore_mem>>) src(%arg3 : memref<512x256xbf16, #tpu.memory_space<any>>) dst(%arg10 : memref<512x256xbf16, #tpu.memory_space<vmem>>)
    %34 = arith.truncf %31 : vector<2x512xf32> to vector<2x512xbf16>
    %c0_12 = arith.constant 0 : index
    %c0_13 = arith.constant 0 : index
    %35 = vector.load %arg10[%c0_12, %c0_13] : memref<512x256xbf16, #tpu.memory_space<vmem>>, vector<512x256xbf16>
    %cst_14 = arith.constant dense<0.000000e+00> : vector<2x256xf32>
    %36 = tpu.matmul %34, %35, %cst_14 {dimension_numbers = #tpu.dot_dimension_numbers<[1], [0], [0], [1], [0, 0, 1, 1], [], []>} : vector<2x512xbf16>, vector<512x256xbf16>, vector<2x256xf32> -> vector<2x256xf32>
    %c0_15 = arith.constant 0 : index
    %c0_16 = arith.constant 0 : index
    %37 = vector.load %arg4[%c0_15, %c0_16] : memref<1x256xf32, #tpu.memory_space<vmem>>, vector<1x256xf32>
    %38 = vector.broadcast %37 : vector<1x256xf32> to vector<2x256xf32>
    %39 = arith.addf %36, %38 : vector<2x256xf32>
    %cst_17 = arith.constant 2.000000e-01 : f32
    %40 = vector.broadcast %cst_17 : f32 to vector<2x256xf32>
    %41 = arith.mulf %40, %39 : vector<2x256xf32>
    %42 = arith.maximumf %39, %41 : vector<2x256xf32>
    %cst_18 = arith.constant dense<0.000000e+00> : vector<2xf32>
    %43 = vector.multi_reduction <add>, %42, %cst_18 [1] : vector<2x256xf32> to vector<2xf32>
    %44 = vector.shape_cast %43 : vector<2xf32> to vector<2x1xf32>
    %cst_19 = arith.constant 3.906250e-03 : f32
    %45 = vector.broadcast %cst_19 : f32 to vector<2x1xf32>
    %46 = arith.mulf %44, %45 : vector<2x1xf32>
    %47 = arith.mulf %42, %42 : vector<2x256xf32>
    %cst_20 = arith.constant dense<0.000000e+00> : vector<2xf32>
    %48 = vector.multi_reduction <add>, %47, %cst_20 [1] : vector<2x256xf32> to vector<2xf32>
    %49 = vector.shape_cast %48 : vector<2xf32> to vector<2x1xf32>
    %cst_21 = arith.constant 3.906250e-03 : f32
    %50 = vector.broadcast %cst_21 : f32 to vector<2x1xf32>
    %51 = arith.mulf %49, %50 : vector<2x1xf32>
    %52 = arith.mulf %46, %46 : vector<2x1xf32>
    %53 = arith.subf %51, %52 : vector<2x1xf32>
    %54 = vector.broadcast %46 : vector<2x1xf32> to vector<2x256xf32>
    %55 = arith.subf %42, %54 : vector<2x256xf32>
    %cst_22 = arith.constant 9.99999974E-6 : f32
    %56 = vector.broadcast %cst_22 : f32 to vector<2x1xf32>
    %57 = arith.addf %53, %56 : vector<2x1xf32>
    %58 = math.rsqrt %57 : vector<2x1xf32>
    %59 = vector.broadcast %58 : vector<2x1xf32> to vector<2x256xf32>
    %60 = arith.mulf %55, %59 : vector<2x256xf32>
    %c1_i32_23 = arith.constant 1 : i32
    %61 = tpu.memref_slice %arg12[%c1_i32_23] : memref<2x!tpu.dma_semaphore, #tpu.memory_space<semaphore_mem>> -> memref<1x!tpu.dma_semaphore, #tpu.memory_space<semaphore_mem>>
    %62 = tpu.memref_squeeze %61 : memref<1x!tpu.dma_semaphore, #tpu.memory_space<semaphore_mem>> -> memref<!tpu.dma_semaphore, #tpu.memory_space<semaphore_mem>>
    tpu.wait_dma2 semaphore(%62 : memref<!tpu.dma_semaphore, #tpu.memory_space<semaphore_mem>>) src(%arg5 : memref<256x256xbf16, #tpu.memory_space<any>>) dst(%arg11 : memref<256x256xbf16, #tpu.memory_space<vmem>>)
    %63 = arith.truncf %60 : vector<2x256xf32> to vector<2x256xbf16>
    %c0_24 = arith.constant 0 : index
    %c0_25 = arith.constant 0 : index
    %64 = vector.load %arg11[%c0_24, %c0_25] : memref<256x256xbf16, #tpu.memory_space<vmem>>, vector<256x256xbf16>
    %cst_26 = arith.constant dense<0.000000e+00> : vector<2x256xf32>
    %65 = tpu.matmul %63, %64, %cst_26 {dimension_numbers = #tpu.dot_dimension_numbers<[1], [0], [0], [1], [0, 0, 1, 1], [], []>} : vector<2x256xbf16>, vector<256x256xbf16>, vector<2x256xf32> -> vector<2x256xf32>
    %c0_27 = arith.constant 0 : index
    %c0_28 = arith.constant 0 : index
    %66 = vector.load %arg6[%c0_27, %c0_28] : memref<1x256xf32, #tpu.memory_space<vmem>>, vector<1x256xf32>
    %67 = vector.broadcast %66 : vector<1x256xf32> to vector<2x256xf32>
    %68 = arith.addf %65, %67 : vector<2x256xf32>
    %cst_29 = arith.constant 2.000000e-01 : f32
    %69 = vector.broadcast %cst_29 : f32 to vector<2x256xf32>
    %70 = arith.mulf %69, %68 : vector<2x256xf32>
    %71 = arith.maximumf %68, %70 : vector<2x256xf32>
    %cst_30 = arith.constant dense<0.000000e+00> : vector<2xf32>
    %72 = vector.multi_reduction <add>, %71, %cst_30 [1] : vector<2x256xf32> to vector<2xf32>
    %73 = vector.shape_cast %72 : vector<2xf32> to vector<2x1xf32>
    %cst_31 = arith.constant 3.906250e-03 : f32
    %74 = vector.broadcast %cst_31 : f32 to vector<2x1xf32>
    %75 = arith.mulf %73, %74 : vector<2x1xf32>
    %76 = arith.mulf %71, %71 : vector<2x256xf32>
    %cst_32 = arith.constant dense<0.000000e+00> : vector<2xf32>
    %77 = vector.multi_reduction <add>, %76, %cst_32 [1] : vector<2x256xf32> to vector<2xf32>
    %78 = vector.shape_cast %77 : vector<2xf32> to vector<2x1xf32>
    %cst_33 = arith.constant 3.906250e-03 : f32
    %79 = vector.broadcast %cst_33 : f32 to vector<2x1xf32>
    %80 = arith.mulf %78, %79 : vector<2x1xf32>
    %81 = arith.mulf %75, %75 : vector<2x1xf32>
    %82 = arith.subf %80, %81 : vector<2x1xf32>
    %83 = vector.broadcast %75 : vector<2x1xf32> to vector<2x256xf32>
    %84 = arith.subf %71, %83 : vector<2x256xf32>
    %cst_34 = arith.constant 9.99999974E-6 : f32
    %85 = vector.broadcast %cst_34 : f32 to vector<2x1xf32>
    %86 = arith.addf %82, %85 : vector<2x1xf32>
    %87 = math.rsqrt %86 : vector<2x1xf32>
    %88 = vector.broadcast %87 : vector<2x1xf32> to vector<2x256xf32>
    %89 = arith.mulf %84, %88 : vector<2x256xf32>
    %c0_35 = arith.constant 0 : index
    %c0_36 = arith.constant 0 : index
    %90 = vector.load %arg7[%c0_35, %c0_36] : memref<1x256xf32, #tpu.memory_space<vmem>>, vector<1x256xf32>
    %91 = vector.broadcast %90 : vector<1x256xf32> to vector<2x256xf32>
    %92 = arith.mulf %89, %91 : vector<2x256xf32>
    %cst_37 = arith.constant dense<0.000000e+00> : vector<2xf32>
    %93 = vector.multi_reduction <add>, %92, %cst_37 [1] : vector<2x256xf32> to vector<2xf32>
    %94 = vector.shape_cast %93 : vector<2xf32> to vector<2x1xf32>
    %c0_38 = arith.constant 0 : index
    %c0_39 = arith.constant 0 : index
    %95 = memref.load %arg8[%c0_38, %c0_39] : memref<1x1xf32, #tpu.memory_space<smem>>
    %96 = vector.broadcast %95 : f32 to vector<2x1xf32>
    %97 = arith.addf %94, %96 : vector<2x1xf32>
    %c0_40 = arith.constant 0 : index
    %c0_41 = arith.constant 0 : index
    %98 = vector.load %arg9[%c0_40, %c0_41] : memref<2x1xf32, #tpu.memory_space<vmem>>, vector<2x1xf32>
    tpu.vector_store %arg9[%c0_40, %c0_41], %97 {strides = array<i32>} : memref<2x1xf32, #tpu.memory_space<vmem>>, vector<2x1xf32>,
    return
  }
}

</mosaic_0001>

<bundles_post_ra>
// kernel: tpu_custom_call.1
= control target key start
LH: loop header
LB: loop body
LE: loop exit
PB: predicated region body
PF: predicated region fallthrough
CT: control target
= control target key end

     0   :  { %15 = vsyncpa [#allocation7], 0  ;;  %s1818_s0 = inlined_call_operand.hbm [shape: f32[2,128], index: 0, kind: input, shape index: {}]   ;;  %s1819_s1 = inlined_call_operand.hbm [shape: bf16[128,512], index: 1, kind: input, shape index: {}]   ;;  %s1820_s2 = inlined_call_operand.vmem [shape: f32[1,512], index: 2, kind: input, shape index: {}]   ;;  %s1821_s3 = inlined_call_operand.hbm [shape: bf16[512,256], index: 3, kind: input, shape index: {}]   ;;  %s1822_s4 = inlined_call_operand.vmem [shape: f32[1,256], index: 4, kind: input, shape index: {}]   ;;  %s1823_s5 = inlined_call_operand.hbm [shape: bf16[256,256], index: 5, kind: input, shape index: {}]   ;;  %s1824_s6 = inlined_call_operand.vmem [shape: f32[1,256], index: 6, kind: input, shape index: {}]   ;;  %s1825_s7 = inlined_call_operand.vmem [shape: f32[1,256], index: 7, kind: input, shape index: {}]   ;;  %s1826_s8 = inlined_call_operand.<no memory space> [shape: f32[1,1], index: 8, kind: input, shape index: {}]   ;;  %s1827_s9 = inlined_call_operand.vmem [shape: f32[2,1], index: 9, kind: output, shape index: {}]  }
   0x1   :  { %16 = vsyncpa [#allocation9], 0  ;;  %s1677_s30 = smov [#allocation6]   ;;  %s1678_s11 = smov [#allocation8]  }
   0x2   :  { %s23_s10 = sshll.u32 %s1677_s30, 4  ;;  %s32_s12 = sshll.u32 %s1678_s11, 4  ;;  %s24_s10 = int_to_ptr.vmem [resolvable:$true] %s23_s10  ;;  %s33_s12 = int_to_ptr.vmem [resolvable:$true] %s32_s12 }
   0x3   :  { %s1597_s13 = scalar_lea.vmem %s24_s10, 32  ;;  %p1602_p1 = scmp.lt.s32.totalorder %s24_s10, %s24_s10 }
   0x4   :  { %p1598_p0 = scmp.ne.s32.totalorder %s24_s10, %s1597_s13  ;;  %p1603_p2 = scmp.lt.s32.totalorder %s1597_s13, %s1597_s13 }
   0x6   :  { %p1604_p3 = por %p1603_p2, %p1602_p1 }
   0x8   :  { %p1605_p4 = pnand %p1604_p3, %p1598_p0 }
   0xa   :  { %1608 = shalt.err (!%p1605_p4)
}
   0xb   :  { %26 = dma.hbm_to_vmem [thread:$0]  %s1818_s0, 32, %s24_s10, [#allocation7]  }
   0xc   :  { %s1617_s16 = scalar_lea.vmem %s33_s12, 4096  ;;  %p1622_p6 = scmp.lt.s32.totalorder %s33_s12, %s33_s12 }
   0xd   :  { %p1618_p5 = scmp.ne.s32.totalorder %s33_s12, %s1617_s16  ;;  %p1623_p7 = scmp.lt.s32.totalorder %s1617_s16, %s1617_s16 }
   0xf   :  { %p1624_p8 = por %p1623_p7, %p1622_p6 }
  0x11   :  { %p1625_p9 = pnand %p1624_p8, %p1618_p5 }
  0x13   :  { %1628 = shalt.err (!%p1625_p9)
}
  0x14   :  { %s1679_s17 = smov 256   ;;  %s1680_s18 = smov 16  }
  0x15   :  { %38 = dma.hbm_to_vmem [thread:$0]  %s1819_s1, 4096, %s33_s12, [#allocation9], %s1679_s17, %s1679_s17, %s1680_s18  }
  0x16   :  { %1669 = dma.done.wait [#allocation7], 32  }
  0x17   :  { %1670 = vsyncadd [#allocation7], 4294967264 }
  0x18   :  { %1671 = dma.done.wait [#allocation9], 4096  }
  0x19   :  { %1672 = vsyncadd [#allocation9], 4294963200  ;;  %v1681_v0 = vmov 0   ;;  %v1391_v1 = vld [vmem:[#allocation8 + $0xe4] ss:$16 sps:$4 sm:$0xff]   ;;  %v115_v39 = vlaneseq  ;;  %vm385_vm0 = vcmask 1041408  }
  0x1a   :  { %327 = vmatprep.mubr.bf16.mxu1 %v1681_v0  ;;  %v1393_v2 = vld [vmem:[#allocation8 + $0xe0] ss:$16 sps:$4 sm:$0xff]   ;;  %295 = vmatprep.subr.bf16.mxu1 %v1391_v1  ;;  %v1394_v3 = vld [vmem:[#allocation8 + $0xc4] ss:$16 sps:$4 sm:$0xff]   ;;  %v79_v17 = vld [vmem:[#allocation6] sm:$0x3] }
  0x1b   :  { %296 = vmatpush1.bf16.msra.mxu1 %v1393_v2  ;;  %v1396_v4 = vld [vmem:[#allocation8 + $0xc0] ss:$16 sps:$4 sm:$0xff]   ;;  %v1397_v5 = vld [vmem:[#allocation8 + $0xa4] ss:$16 sps:$4 sm:$0xff]   ;;  %v1417_v18 = vld [vmem:[#allocation8 + $0xec] ss:$16 sps:$4 sm:$0xff]   ;;  %v80_v19 = vpack.c.bf16 %v79_v17, %v79_v17 }
  0x1c   :  { %297 = vmatprep.subr.bf16.mxu1 %v1394_v3  ;;  %v1399_v6 = vld [vmem:[#allocation8 + $0xa0] ss:$16 sps:$4 sm:$0xff]   ;;  %v1400_v7 = vld [vmem:[#allocation8 + $0x84] ss:$16 sps:$4 sm:$0xff]   ;;  %v1415_v20 = vld [vmem:[#allocation8 + $0xe8] ss:$16 sps:$4 sm:$0xff]  }
  0x1d   :  { %v1402_v8 = vld [vmem:[#allocation8 + $0x80] ss:$16 sps:$4 sm:$0xff]   ;;  %v1403_v9 = vld [vmem:[#allocation8 + $0x64] ss:$16 sps:$4 sm:$0xff]   ;;  %v1420_v21 = vld [vmem:[#allocation8 + $0xcc] ss:$16 sps:$4 sm:$0xff]  }
  0x1e   :  { %v1405_v10 = vld [vmem:[#allocation8 + $0x60] ss:$16 sps:$4 sm:$0xff]   ;;  %v1406_v11 = vld [vmem:[#allocation8 + $0x44] ss:$16 sps:$4 sm:$0xff]   ;;  %v1418_v22 = vld [vmem:[#allocation8 + $0xc8] ss:$16 sps:$4 sm:$0xff]  }
  0x1f   :  { %298 = vmatpush1.bf16.msra.mxu1 %v1396_v4  ;;  %v1408_v12 = vld [vmem:[#allocation8 + $0x40] ss:$16 sps:$4 sm:$0xff]   ;;  %v1409_v13 = vld [vmem:[#allocation8 + $0x24] ss:$16 sps:$4 sm:$0xff]   ;;  %v1423_v23 = vld [vmem:[#allocation8 + $0xac] ss:$16 sps:$4 sm:$0xff]  }
  0x20   :  { %299 = vmatprep.subr.bf16.mxu1 %v1397_v5  ;;  %v1411_v14 = vld [vmem:[#allocation8 + $0x20] ss:$16 sps:$4 sm:$0xff]   ;;  %v1412_v15 = vld [vmem:[#allocation8 + $0x4] ss:$16 sps:$4 sm:$0xff]   ;;  %v1421_v24 = vld [vmem:[#allocation8 + $0xa8] ss:$16 sps:$4 sm:$0xff]  }
  0x21   :  { %v1414_v16 = vld [vmem:[#allocation8] ss:$16 sps:$4 sm:$0xff]   ;;  %v1426_v25 = vld [vmem:[#allocation8 + $0x8c] ss:$16 sps:$4 sm:$0xff]   ;;  %v1424_v26 = vld [vmem:[#allocation8 + $0x88] ss:$16 sps:$4 sm:$0xff]  }
  0x22   :  { %v1429_v27 = vld [vmem:[#allocation8 + $0x6c] ss:$16 sps:$4 sm:$0xff]   ;;  %v1427_v28 = vld [vmem:[#allocation8 + $0x68] ss:$16 sps:$4 sm:$0xff]   ;;  %v116_v40 = vshrl.u32 %v115_v39, 7  ;;  %s1683_s22 = smov [#allocation3]  }
  0x23   :  { %300 = vmatpush1.bf16.msra.mxu1 %v1399_v6  ;;  %v1432_v29 = vld [vmem:[#allocation8 + $0x4c] ss:$16 sps:$4 sm:$0xff]   ;;  %v1430_v30 = vld [vmem:[#allocation8 + $0x48] ss:$16 sps:$4 sm:$0xff]   ;;  %s75_s23 = sshll.u32 %s1683_s22, 4  ;;  %s76_s23 = int_to_ptr.vmem [resolvable:$true] %s75_s23 }
  0x24   :  { %301 = vmatprep.subr.bf16.mxu1 %v1400_v7  ;;  %v1435_v31 = vld [vmem:[#allocation8 + $0x2c] ss:$16 sps:$4 sm:$0xff]   ;;  %v1433_v32 = vld [vmem:[#allocation8 + $0x28] ss:$16 sps:$4 sm:$0xff]   ;;  %v1740_v41 = vsub.s32 1, %v116_v40  ;;  %v1742_v42 = vsub.s32 0, %v116_v40 }
  0x25   :  { %v1438_v33 = vld [vmem:[#allocation8 + $0xc] ss:$16 sps:$4 sm:$0xff]   ;;  %v1436_v34 = vld [vmem:[#allocation8 + $0x8] ss:$16 sps:$4 sm:$0xff]   ;;  %v125_v49 = vsub.s32 2, %v116_v40  ;;  %v129_v51 = vsub.s32 3, %v116_v40 }
  0x26   :  { %v113_v43 = vld [vmem:[%s1820_s2] sm:$0xf]  ;;  %s1682_s2 = smov [#allocation2]  }
  0x27   :  { %302 = vmatpush1.bf16.msra.mxu1 %v1402_v8  ;;  %v122_v44 = vrot.slane %v113_v43, %v1740_v41  ;;  %v118_v45 = vrot.slane %v113_v43, %v1742_v42  ;;  %v126_v53 = vrot.slane %v113_v43, %v125_v49  ;;  %v130_v55 = vrot.slane %v113_v43, %v129_v51  ;;  %s63_s21 = sshll.u32 %s1682_s2, 4  ;;  %s64_s21 = int_to_ptr.vmem [resolvable:$true] %s63_s21 }
  0x28   :  { %303 = vmatprep.subr.bf16.mxu1 %v1403_v9  ;;  %s1637_s24 = scalar_lea.vmem %s64_s21, 8192  ;;  %p1642_p11 = scmp.lt.s32.totalorder %s64_s21, %s64_s21 }
  0x29   :  { %p1638_p10 = scmp.ne.s32.totalorder %s64_s21, %s1637_s24  ;;  %p1643_p12 = scmp.lt.s32.totalorder %s1637_s24, %s1637_s24 }
  0x2b   :  { %304 = vmatpush1.bf16.msra.mxu1 %v1405_v10  ;;  %p1644_p13 = por %p1643_p12, %p1642_p11 }
  0x2c   :  { %305 = vmatprep.subr.bf16.mxu1 %v1406_v11 }
  0x2d   :  { %p1645_p0 = pnand %p1644_p13, %p1638_p10 }
  0x2f   :  { %306 = vmatpush1.bf16.msra.mxu1 %v1408_v12 }
  0x30   :  { %307 = vmatprep.subr.bf16.mxu1 %v1409_v13 }
  0x33   :  { %308 = vmatpush1.bf16.msra.mxu1 %v1411_v14 }
  0x34   :  { %309 = vmatprep.subr.bf16.mxu1 %v1412_v15 }
  0x37   :  { %310 = vmatpush1.bf16.msra.mxu1 %v1414_v16 }
  0x38   :  { %336 = vmatprep.subr.bf16.mxu1 %v1417_v18 }
  0x3a   :  { %328 = vmatmul.mubr.bf16.vlgmr.msra.gmra.mxu1 %v80_v19 }
  0x3b   :  { %337 = vmatpush1.bf16.msra.mxu1 %v1415_v20  ;;  %368 = vmatprep.mubr.bf16.mxu1 %v1681_v0 }
  0x3c   :  { %338 = vmatprep.subr.bf16.mxu1 %v1420_v21 }
  0x3f   :  { %339 = vmatpush1.bf16.msra.mxu1 %v1418_v22 }
  0x40   :  { %340 = vmatprep.subr.bf16.mxu1 %v1423_v23 }
  0x43   :  { %341 = vmatpush1.bf16.msra.mxu1 %v1421_v24 }
  0x44   :  { %342 = vmatprep.subr.bf16.mxu1 %v1426_v25 }
  0x47   :  { %343 = vmatpush1.bf16.msra.mxu1 %v1424_v26 }
  0x48   :  { %344 = vmatprep.subr.bf16.mxu1 %v1429_v27 }
  0x4b   :  { %345 = vmatpush1.bf16.msra.mxu1 %v1427_v28 }
  0x4c   :  { %346 = vmatprep.subr.bf16.mxu1 %v1432_v29 }
  0x4f   :  { %347 = vmatpush1.bf16.msra.mxu1 %v1430_v30 }
  0x50   :  { %348 = vmatprep.subr.bf16.mxu1 %v1435_v31 }
  0x53   :  { %349 = vmatpush1.bf16.msra.mxu1 %v1433_v32 }
  0x54   :  { %350 = vmatprep.subr.bf16.mxu1 %v1438_v33 }
  0x57   :  { %351 = vmatpush1.bf16.msra.mxu1 %v1436_v34 }
  0x5a   :  { %369 = vmatmul.mubr.bf16.vlgmr.msra.gmra.mxu1 %v80_v19 }
  0xfa   :  { %v329_v35 = vpop.f32.mrf.mxu1 }
  0xfb   :  { %v330_v47 = vadd.f32 %v329_v35, %v118_v45 }
  0xfc   :  { %v331_v36 = vpop.f32.mrf.mxu1 }
  0xfd   :  { %v332_v46 = vadd.f32 %v331_v36, %v122_v44  ;;  %v377_v50 = vmul.f32 0.2, %v330_v47 }
  0xfe   :  { %v333_v37 = vpop.f32.mrf.mxu1 }
  0xff   :  { %v378_v48 = vmul.f32 0.2, %v332_v46  ;;  %v1751_v54 = vmax.f32 %v330_v47, %v377_v50 }
 0x100   :  { %v334_v38 = vpop.f32.mrf.mxu1 }
 0x101   :  { %v1749_v52 = vmax.f32 %v332_v46, %v378_v48  ;;  %v396_v60 = vmul.f32 %v1751_v54, %v1751_v54  ;;  %v386_v3 = vsel %vm385_vm0, %v1751_v54, 0.0 }
 0x103   :  { %v397_v57 = vmul.f32 %v1749_v52, %v1749_v52  ;;  %v387_v63 = vsel %vm385_vm0, %v1749_v52, 0.0  ;;  %v400_v10 = vsel %vm385_vm0, %v396_v60, 0.0 }
 0x104   :  { %v388_v6 = vadd.f32 %v387_v63, %v386_v3 }
 0x105   :  { %v401_v4 = vsel %vm385_vm0, %v397_v57, 0.0 }
 0x106   :  { %v402_v12 = vadd.f32 %v401_v4, %v400_v10 }
 0x11a   :  { %v370_v56 = vpop.f32.mrf.mxu1 }
 0x11b   :  { %v371_v58 = vadd.f32 %v370_v56, %v126_v53 }
 0x11c   :  { %v372_v59 = vpop.f32.mrf.mxu1 }
 0x11d   :  { %v379_v61 = vmul.f32 0.2, %v371_v58  ;;  %v373_v62 = vadd.f32 %v372_v59, %v130_v55 }
 0x11e   :  { %v374_v0 = vpop.f32.mrf.mxu1 }
 0x11f   :  { %v383_v1 = vmax.f32 %v371_v58, %v379_v61  ;;  %v380_v2 = vmul.f32 0.2, %v373_v62 }
 0x120   :  { %v375_v5 = vpop.f32.mrf.mxu1 }
 0x121   :  { %v384_v7 = vmax.f32 %v373_v62, %v380_v2  ;;  %v389_v8 = vsel %vm385_vm0, %v383_v1, 0.0  ;;  %v398_v9 = vmul.f32 %v383_v1, %v383_v1 }
 0x122   :  { %v390_v11 = vadd.f32 %v389_v8, %v388_v6 }
 0x123   :  { %v391_v13 = vsel %vm385_vm0, %v384_v7, 0.0  ;;  %v399_v14 = vmul.f32 %v384_v7, %v384_v7  ;;  %v403_v15 = vsel %vm385_vm0, %v398_v9, 0.0 }
 0x124   :  { %v392_v16 = vadd.f32 %v391_v13, %v390_v11  ;;  %v404_v17 = vadd.f32 %v403_v15, %v402_v12 }
 0x125   :  { %v405_v18 = vsel %vm385_vm0, %v399_v14, 0.0 }
 0x126   :  { %393 = vadd.xlane.f32.xlu0 %v392_v16  ;;  %v406_v19 = vadd.f32 %v405_v18, %v404_v17 }
 0x12a   :  { %407 = vadd.xlane.f32.xlu0 %v406_v19 }
 0x12b   :  { %1648 = shalt.err (!%p1645_p0)  }
 0x12c   :  { %66 = dma.hbm_to_vmem [thread:$0]  %s1821_s3, 8192, %s64_s21, [#allocation4] }
 0x12d   :  { %s1657_s27 = scalar_lea.vmem %s76_s23, 4096  ;;  %p1662_p2 = scmp.lt.s32.totalorder %s76_s23, %s76_s23 }
 0x12e   :  { %p1658_p1 = scmp.ne.s32.totalorder %s76_s23, %s1657_s27  ;;  %p1663_p3 = scmp.lt.s32.totalorder %s1657_s27, %s1657_s27 }
 0x130   :  { %p1664_p4 = por %p1663_p3, %p1662_p2 }
 0x132   :  { %p1665_p5 = pnand %p1664_p4, %p1658_p1 }
 0x134   :  { %1668 = shalt.err (!%p1665_p5)  }
 0x135   :  { %78 = dma.hbm_to_vmem [thread:$0]  %s1823_s5, 4096, %s76_s23, [#allocation4 + $0x1] }
 0x1af   :  { %v394_v20 = vpop.xlane.xlu0 %393 }
 0x1b0   :  { %v395_v21 = vmul.f32 0.001953125, %v394_v20 }
 0x1b2   :  { %v410_v23 = vmul.f32 %v395_v21, %v395_v21  ;;  %v412_v27 = vsub.f32 %v1751_v54, %v395_v21  ;;  %v413_v28 = vsub.f32 %v1749_v52, %v395_v21  ;;  %v414_v29 = vsub.f32 %v383_v1, %v395_v21 }
 0x1b3   :  { %v408_v22 = vpop.xlane.xlu0 %407  ;;  %v415_v30 = vsub.f32 %v384_v7, %v395_v21 }
 0x1b4   :  { %v409_v24 = vmul.f32 0.001953125, %v408_v22 }
 0x1b6   :  { %v411_v25 = vsub.f32 %v409_v24, %v410_v23 }
 0x1b8   :  { %v416_v26 = vadd.f32 1e-05, %v411_v25 }
 0x1ba   :  { %1439 = vrsqrt.f32 %v416_v26 }
 0x1c7   :  { %v1440_v31 = vpop.eup %1439 }
 0x1c8   :  { %v1775_v32 = vmul.f32 %v1440_v31, %v412_v27  ;;  %v419_v33 = vmul.f32 %v1440_v31, %v413_v28  ;;  %v1777_v34 = vmul.f32 %v1440_v31, %v414_v29  ;;  %v421_v35 = vmul.f32 %v1440_v31, %v415_v30 }
 0x1c9   :  { %1673 = dma.done.wait [#allocation4], 8192 }
 0x1ca   :  { %1674 = vsyncadd [#allocation4], 4294959104  ;;  %v427_v36 = vpack.c.bf16 %v419_v33, %v419_v33  ;;  %v429_v37 = vpack.c.bf16 %v421_v35, %v421_v35  ;;  %v1441_v38 = vld [vmem:[#allocation2 + $0x74] ss:$8 sps:$4 sm:$0xff]   ;;  %v1445_v40 = vld [vmem:[#allocation2 + $0x70] ss:$8 sps:$4 sm:$0xff]  }
 0x1cb   :  { %v1443_v39 = vld [vmem:[#allocation2 + $0x174] ss:$8 sps:$4 sm:$0xff]   ;;  %826 = vmatprep.subr.bf16.mxu0 %v1441_v38  ;;  %v1446_v43 = vld [vmem:[#allocation2 + $0x170] ss:$8 sps:$4 sm:$0xff]   ;;  %v1447_v44 = vld [vmem:[#allocation2 + $0x64] ss:$8 sps:$4 sm:$0xff]  }
 0x1cc   :  { %858 = vmatprep.mubr.bf16.mxu0 %v427_v36  ;;  %899 = vmatprep.mubr.bf16.mxu1 %v429_v37  ;;  %v1449_v45 = vld [vmem:[#allocation2 + $0x164] ss:$8 sps:$4 sm:$0xff]   ;;  %v1451_v46 = vld [vmem:[#allocation2 + $0x60] ss:$8 sps:$4 sm:$0xff]   ;;  %v1453_v48 = vld [vmem:[#allocation2 + $0x54] ss:$8 sps:$4 sm:$0xff]  }
 0x1cd   :  { %867 = vmatprep.subr.bf16.mxu1 %v1443_v39  ;;  %827 = vmatpush1.bf16.msra.mxu0 %v1445_v40  ;;  %v1452_v47 = vld [vmem:[#allocation2 + $0x160] ss:$8 sps:$4 sm:$0xff]   ;;  %v1455_v49 = vld [vmem:[#allocation2 + $0x154] ss:$8 sps:$4 sm:$0xff]   ;;  %v1457_v50 = vld [vmem:[#allocation2 + $0x50] ss:$8 sps:$4 sm:$0xff]  }
 0x1ce   :  { %868 = vmatpush1.bf16.msra.mxu1 %v1446_v43  ;;  %828 = vmatprep.subr.bf16.mxu0 %v1447_v44  ;;  %v1458_v51 = vld [vmem:[#allocation2 + $0x150] ss:$8 sps:$4 sm:$0xff]   ;;  %v1459_v52 = vld [vmem:[#allocation2 + $0x44] ss:$8 sps:$4 sm:$0xff]   ;;  %v1463_v54 = vld [vmem:[#allocation2 + $0x40] ss:$8 sps:$4 sm:$0xff]   ;;  %v426_v44 = vpack.c.bf16 %v1775_v32, %v1775_v32 }
 0x1cf   :  { %869 = vmatprep.subr.bf16.mxu1 %v1449_v45  ;;  %v1461_v53 = vld [vmem:[#allocation2 + $0x144] ss:$8 sps:$4 sm:$0xff]   ;;  %v1464_v55 = vld [vmem:[#allocation2 + $0x140] ss:$8 sps:$4 sm:$0xff]   ;;  %v1465_v56 = vld [vmem:[#allocation2 + $0x34] ss:$8 sps:$4 sm:$0xff]   ;;  %v428_v45 = vpack.c.bf16 %v1777_v34, %v1777_v34 }
 0x1d0   :  { %v1467_v57 = vld [vmem:[#allocation2 + $0x134] ss:$8 sps:$4 sm:$0xff]   ;;  %v1469_v58 = vld [vmem:[#allocation2 + $0x30] ss:$8 sps:$4 sm:$0xff]   ;;  %v1471_v60 = vld [vmem:[#allocation2 + $0x24] ss:$8 sps:$4 sm:$0xff]  }
 0x1d1   :  { %829 = vmatpush1.bf16.msra.mxu0 %v1451_v46  ;;  %v1470_v59 = vld [vmem:[#allocation2 + $0x130] ss:$8 sps:$4 sm:$0xff]   ;;  %v1473_v61 = vld [vmem:[#allocation2 + $0x124] ss:$8 sps:$4 sm:$0xff]   ;;  %v1475_v62 = vld [vmem:[#allocation2 + $0x20] ss:$8 sps:$4 sm:$0xff]  }
 0x1d2   :  { %870 = vmatpush1.bf16.msra.mxu1 %v1452_v47  ;;  %830 = vmatprep.subr.bf16.mxu0 %v1453_v48  ;;  %v1476_v63 = vld [vmem:[#allocation2 + $0x120] ss:$8 sps:$4 sm:$0xff]   ;;  %v1477_v0 = vld [vmem:[#allocation2 + $0x14] ss:$8 sps:$4 sm:$0xff]   ;;  %v1481_v2 = vld [vmem:[#allocation2 + $0x10] ss:$8 sps:$4 sm:$0xff]  }
 0x1d3   :  { %871 = vmatprep.subr.bf16.mxu1 %v1455_v49  ;;  %v1479_v1 = vld [vmem:[#allocation2 + $0x114] ss:$8 sps:$4 sm:$0xff]   ;;  %v1482_v3 = vld [vmem:[#allocation2 + $0x110] ss:$8 sps:$4 sm:$0xff]   ;;  %v1483_v4 = vld [vmem:[#allocation2 + $0x4] ss:$8 sps:$4 sm:$0xff]  }
 0x1d4   :  { %v1485_v5 = vld [vmem:[#allocation2 + $0x104] ss:$8 sps:$4 sm:$0xff]   ;;  %v1487_v6 = vld [vmem:[#allocation2] ss:$8 sps:$4 sm:$0xff]   ;;  %v1489_v8 = vld [vmem:[#allocation2 + $0xf4] ss:$8 sps:$4 sm:$0xff]  }
 0x1d5   :  { %831 = vmatpush1.bf16.msra.mxu0 %v1457_v50  ;;  %v1488_v7 = vld [vmem:[#allocation2 + $0x100] ss:$8 sps:$4 sm:$0xff]   ;;  %v1491_v9 = vld [vmem:[#allocation2 + $0x1f4] ss:$8 sps:$4 sm:$0xff]   ;;  %v1493_v10 = vld [vmem:[#allocation2 + $0xf0] ss:$8 sps:$4 sm:$0xff]  }
 0x1d6   :  { %872 = vmatpush1.bf16.msra.mxu1 %v1458_v51  ;;  %832 = vmatprep.subr.bf16.mxu0 %v1459_v52  ;;  %v1494_v11 = vld [vmem:[#allocation2 + $0x1f0] ss:$8 sps:$4 sm:$0xff]   ;;  %v1495_v12 = vld [vmem:[#allocation2 + $0xe4] ss:$8 sps:$4 sm:$0xff]   ;;  %v1499_v14 = vld [vmem:[#allocation2 + $0xe0] ss:$8 sps:$4 sm:$0xff]  }
 0x1d7   :  { %873 = vmatprep.subr.bf16.mxu1 %v1461_v53  ;;  %v1497_v13 = vld [vmem:[#allocation2 + $0x1e4] ss:$8 sps:$4 sm:$0xff]   ;;  %v1500_v15 = vld [vmem:[#allocation2 + $0x1e0] ss:$8 sps:$4 sm:$0xff]   ;;  %v1501_v16 = vld [vmem:[#allocation2 + $0xd4] ss:$8 sps:$4 sm:$0xff]  }
 0x1d8   :  { %v1503_v17 = vld [vmem:[#allocation2 + $0x1d4] ss:$8 sps:$4 sm:$0xff]   ;;  %v1505_v18 = vld [vmem:[#allocation2 + $0xd0] ss:$8 sps:$4 sm:$0xff]   ;;  %v1507_v20 = vld [vmem:[#allocation2 + $0xc4] ss:$8 sps:$4 sm:$0xff]  }
 0x1d9   :  { %833 = vmatpush1.bf16.msra.mxu0 %v1463_v54  ;;  %v1506_v19 = vld [vmem:[#allocation2 + $0x1d0] ss:$8 sps:$4 sm:$0xff]   ;;  %v1509_v21 = vld [vmem:[#allocation2 + $0x1c4] ss:$8 sps:$4 sm:$0xff]   ;;  %v1511_v22 = vld [vmem:[#allocation2 + $0xc0] ss:$8 sps:$4 sm:$0xff]  }
 0x1da   :  { %874 = vmatpush1.bf16.msra.mxu1 %v1464_v55  ;;  %834 = vmatprep.subr.bf16.mxu0 %v1465_v56  ;;  %v1512_v23 = vld [vmem:[#allocation2 + $0x1c0] ss:$8 sps:$4 sm:$0xff]   ;;  %v1513_v24 = vld [vmem:[#allocation2 + $0xb4] ss:$8 sps:$4 sm:$0xff]   ;;  %v1517_v26 = vld [vmem:[#allocation2 + $0xb0] ss:$8 sps:$4 sm:$0xff]  }
 0x1db   :  { %875 = vmatprep.subr.bf16.mxu1 %v1467_v57  ;;  %v1515_v25 = vld [vmem:[#allocation2 + $0x1b4] ss:$8 sps:$4 sm:$0xff]   ;;  %v1518_v27 = vld [vmem:[#allocation2 + $0x1b0] ss:$8 sps:$4 sm:$0xff]   ;;  %v1519_v28 = vld [vmem:[#allocation2 + $0xa4] ss:$8 sps:$4 sm:$0xff]  }
 0x1dc   :  { %v1521_v29 = vld [vmem:[#allocation2 + $0x1a4] ss:$8 sps:$4 sm:$0xff]   ;;  %v1523_v30 = vld [vmem:[#allocation2 + $0xa0] ss:$8 sps:$4 sm:$0xff]   ;;  %v1525_v33 = vld [vmem:[#allocation2 + $0x94] ss:$8 sps:$4 sm:$0xff]  }
 0x1dd   :  { %835 = vmatpush1.bf16.msra.mxu0 %v1469_v58  ;;  %v1524_v31 = vld [vmem:[#allocation2 + $0x1a0] ss:$8 sps:$4 sm:$0xff]   ;;  %v1527_v35 = vld [vmem:[#allocation2 + $0x194] ss:$8 sps:$4 sm:$0xff]   ;;  %v1529_v36 = vld [vmem:[#allocation2 + $0x90] ss:$8 sps:$4 sm:$0xff]  }
 0x1de   :  { %876 = vmatpush1.bf16.msra.mxu1 %v1470_v59  ;;  %836 = vmatprep.subr.bf16.mxu0 %v1471_v60  ;;  %v1530_v37 = vld [vmem:[#allocation2 + $0x190] ss:$8 sps:$4 sm:$0xff]   ;;  %v1531_v38 = vld [vmem:[#allocation2 + $0x84] ss:$8 sps:$4 sm:$0xff]   ;;  %v1535_v40 = vld [vmem:[#allocation2 + $0x80] ss:$8 sps:$4 sm:$0xff]  }
 0x1df   :  { %877 = vmatprep.subr.bf16.mxu1 %v1473_v61  ;;  %v1533_v39 = vld [vmem:[#allocation2 + $0x184] ss:$8 sps:$4 sm:$0xff]   ;;  %v1536_v43 = vld [vmem:[#allocation2 + $0x180] ss:$8 sps:$4 sm:$0xff]  }
 0x1e0   :  { %v494_v46 = vld [vmem:[%s1822_s4] sm:$0x3] }
 0x1e1   :  { %837 = vmatpush1.bf16.msra.mxu0 %v1475_v62  ;;  %v499_v47 = vrot.slane %v494_v46, %v1742_v42  ;;  %v503_v48 = vrot.slane %v494_v46, %v1740_v41 }
 0x1e2   :  { %878 = vmatpush1.bf16.msra.mxu1 %v1476_v63  ;;  %838 = vmatprep.subr.bf16.mxu0 %v1477_v0 }
 0x1e3   :  { %879 = vmatprep.subr.bf16.mxu1 %v1479_v1 }
 0x1e5   :  { %839 = vmatpush1.bf16.msra.mxu0 %v1481_v2 }
 0x1e6   :  { %880 = vmatpush1.bf16.msra.mxu1 %v1482_v3  ;;  %840 = vmatprep.subr.bf16.mxu0 %v1483_v4 }
 0x1e7   :  { %881 = vmatprep.subr.bf16.mxu1 %v1485_v5 }
 0x1e9   :  { %841 = vmatpush1.bf16.msra.mxu0 %v1487_v6 }
 0x1ea   :  { %882 = vmatpush1.bf16.msra.mxu1 %v1488_v7  ;;  %842 = vmatprep.subr.bf16.mxu0 %v1489_v8 }
 0x1eb   :  { %883 = vmatprep.subr.bf16.mxu1 %v1491_v9 }
 0x1ed   :  { %843 = vmatpush2.bf16.msra.mxu0 %v1493_v10 }
 0x1ee   :  { %884 = vmatpush2.bf16.msra.mxu1 %v1494_v11  ;;  %844 = vmatprep.subr.bf16.mxu0 %v1495_v12 }
 0x1ef   :  { %885 = vmatprep.subr.bf16.mxu1 %v1497_v13 }
 0x1f1   :  { %845 = vmatpush2.bf16.msra.mxu0 %v1499_v14 }
 0x1f2   :  { %886 = vmatpush2.bf16.msra.mxu1 %v1500_v15  ;;  %846 = vmatprep.subr.bf16.mxu0 %v1501_v16 }
 0x1f3   :  { %887 = vmatprep.subr.bf16.mxu1 %v1503_v17 }
 0x1f5   :  { %847 = vmatpush2.bf16.msra.mxu0 %v1505_v18 }
 0x1f6   :  { %888 = vmatpush2.bf16.msra.mxu1 %v1506_v19  ;;  %848 = vmatprep.subr.bf16.mxu0 %v1507_v20 }
 0x1f7   :  { %889 = vmatprep.subr.bf16.mxu1 %v1509_v21 }
 0x1f9   :  { %849 = vmatpush2.bf16.msra.mxu0 %v1511_v22 }
 0x1fa   :  { %890 = vmatpush2.bf16.msra.mxu1 %v1512_v23  ;;  %850 = vmatprep.subr.bf16.mxu0 %v1513_v24 }
 0x1fb   :  { %891 = vmatprep.subr.bf16.mxu1 %v1515_v25 }
 0x1fd   :  { %851 = vmatpush2.bf16.msra.mxu0 %v1517_v26 }
 0x1fe   :  { %892 = vmatpush2.bf16.msra.mxu1 %v1518_v27  ;;  %852 = vmatprep.subr.bf16.mxu0 %v1519_v28 }
 0x1ff   :  { %893 = vmatprep.subr.bf16.mxu1 %v1521_v29 }
 0x201   :  { %853 = vmatpush2.bf16.msra.mxu0 %v1523_v30 }
 0x202   :  { %894 = vmatpush2.bf16.msra.mxu1 %v1524_v31  ;;  %854 = vmatprep.subr.bf16.mxu0 %v1525_v33 }
 0x203   :  { %895 = vmatprep.subr.bf16.mxu1 %v1527_v35 }
 0x205   :  { %855 = vmatpush2.bf16.msra.mxu0 %v1529_v36 }
 0x206   :  { %896 = vmatpush2.bf16.msra.mxu1 %v1530_v37  ;;  %856 = vmatprep.subr.bf16.mxu0 %v1531_v38 }
 0x207   :  { %897 = vmatprep.subr.bf16.mxu1 %v1533_v39 }
 0x209   :  { %857 = vmatpush2.bf16.msra.mxu0 %v1535_v40 }
 0x20a   :  { %898 = vmatpush2.bf16.msra.mxu1 %v1536_v43 }
 0x20c   :  { %859 = vmatmul.mubr.bf16.vlgmr.msra.gmra.mxu0 %v426_v44 }
 0x20d   :  { %900 = vmatmul.mubr.bf16.vlgmr.msra.gmra.mxu1 %v428_v45 }
 0x2cc   :  { %v860_v49 = vpop.f32.mrf.mxu0 }
 0x2cd   :  { %v901_v50 = vpop.f32.mrf.mxu1  ;;  %v861_v51 = vadd.f32 %v860_v49, %v499_v47 }
 0x2ce   :  { %v862_v52 = vpop.f32.mrf.mxu0 }
 0x2cf   :  { %v903_v32 = vpop.f32.mrf.mxu1  ;;  %v902_v53 = vadd.f32 %v901_v50, %v861_v51  ;;  %v863_v54 = vadd.f32 %v862_v52, %v503_v48 }
 0x2d0   :  { %v864_v34 = vpop.f32.mrf.mxu0 }
 0x2d1   :  { %v905_v55 = vpop.f32.mrf.mxu1  ;;  %v908_v56 = vmul.f32 0.2, %v902_v53  ;;  %v904_v57 = vadd.f32 %v903_v32, %v863_v54 }
 0x2d2   :  { %v865_v58 = vpop.f32.mrf.mxu0 }
 0x2d3   :  { %v906_v59 = vpop.f32.mrf.mxu1  ;;  %v910_v60 = vmax.f32 %v902_v53, %v908_v56  ;;  %v909_v61 = vmul.f32 0.2, %v904_v57 }
 0x2d5   :  { %v911_v62 = vmax.f32 %v904_v57, %v909_v61  ;;  %v912_v63 = vsel %vm385_vm0, %v910_v60, 0.0  ;;  %v918_v1 = vmul.f32 %v910_v60, %v910_v60 }
 0x2d7   :  { %v913_v0 = vsel %vm385_vm0, %v911_v62, 0.0  ;;  %v919_v2 = vmul.f32 %v911_v62, %v911_v62  ;;  %v920_v5 = vsel %vm385_vm0, %v918_v1, 0.0 }
 0x2d8   :  { %v914_v3 = vadd.f32 %v913_v0, %v912_v63 }
 0x2d9   :  { %v921_v4 = vsel %vm385_vm0, %v919_v2, 0.0 }
 0x2da   :  { %915 = vadd.xlane.f32.xlu0 %v914_v3  ;;  %v922_v6 = vadd.f32 %v921_v4, %v920_v5 }
 0x2de   :  { %923 = vadd.xlane.f32.xlu0 %v922_v6 }
 0x363   :  { %v916_v7 = vpop.xlane.xlu0 %915 }
 0x364   :  { %v917_v8 = vmul.f32 0.00390625, %v916_v7 }
 0x366   :  { %v926_v10 = vmul.f32 %v917_v8, %v917_v8  ;;  %v928_v14 = vsub.f32 %v910_v60, %v917_v8  ;;  %v929_v15 = vsub.f32 %v911_v62, %v917_v8 }
 0x367   :  { %v924_v9 = vpop.xlane.xlu0 %923 }
 0x368   :  { %v925_v11 = vmul.f32 0.00390625, %v924_v9 }
 0x36a   :  { %v927_v12 = vsub.f32 %v925_v11, %v926_v10 }
 0x36c   :  { %v930_v13 = vadd.f32 1e-05, %v927_v12 }
 0x36e   :  { %1537 = vrsqrt.f32 %v930_v13 }
 0x37b   :  { %v1538_v16 = vpop.eup %1537 }
 0x37c   :  { %v1792_v17 = vmul.f32 %v1538_v16, %v928_v14  ;;  %v933_v18 = vmul.f32 %v1538_v16, %v929_v15 }
 0x37d   :  { %1675 = dma.done.wait [#allocation4 + $0x1], 4096 }
 0x37e   :  { %1676 = vsyncadd [#allocation4 + $0x1], 4294963200  ;;  %v939_v19 = vpack.c.bf16 %v933_v18, %v933_v18  ;;  %v1539_v20 = vld [vmem:[#allocation3 + $0x74] ss:$8 sps:$4 sm:$0xff]   ;;  %v1541_v21 = vld [vmem:[#allocation3 + $0x70] ss:$8 sps:$4 sm:$0xff]   ;;  %v938_v34 = vpack.c.bf16 %v1792_v17, %v1792_v17 }
 0x37f   :  { %1144 = vmatprep.subr.bf16.mxu0 %v1539_v20  ;;  %v1542_v22 = vld [vmem:[#allocation3 + $0x64] ss:$8 sps:$4 sm:$0xff]   ;;  %v1544_v23 = vld [vmem:[#allocation3 + $0x60] ss:$8 sps:$4 sm:$0xff]   ;;  %v1545_v24 = vld [vmem:[#allocation3 + $0x54] ss:$8 sps:$4 sm:$0xff]  }
 0x380   :  { %1176 = vmatprep.mubr.bf16.mxu0 %v939_v19  ;;  %1145 = vmatpush1.bf16.msra.mxu0 %v1541_v21  ;;  %v1547_v25 = vld [vmem:[#allocation3 + $0x50] ss:$8 sps:$4 sm:$0xff]   ;;  %v1548_v26 = vld [vmem:[#allocation3 + $0x44] ss:$8 sps:$4 sm:$0xff]   ;;  %v1550_v27 = vld [vmem:[#allocation3 + $0x40] ss:$8 sps:$4 sm:$0xff]  }
 0x381   :  { %1146 = vmatprep.subr.bf16.mxu0 %v1542_v22  ;;  %v1551_v28 = vld [vmem:[#allocation3 + $0x34] ss:$8 sps:$4 sm:$0xff]   ;;  %v1553_v29 = vld [vmem:[#allocation3 + $0x30] ss:$8 sps:$4 sm:$0xff]   ;;  %v1554_v30 = vld [vmem:[#allocation3 + $0x24] ss:$8 sps:$4 sm:$0xff]  }
 0x382   :  { %v1556_v31 = vld [vmem:[#allocation3 + $0x20] ss:$8 sps:$4 sm:$0xff]   ;;  %v1557_v33 = vld [vmem:[#allocation3 + $0x14] ss:$8 sps:$4 sm:$0xff]   ;;  %v1559_v35 = vld [vmem:[#allocation3 + $0x10] ss:$8 sps:$4 sm:$0xff]  }
 0x383   :  { %v1560_v36 = vld [vmem:[#allocation3 + $0x4] ss:$8 sps:$4 sm:$0xff]   ;;  %v1562_v37 = vld [vmem:[#allocation3] ss:$8 sps:$4 sm:$0xff]   ;;  %v1563_v38 = vld [vmem:[#allocation3 + $0xf4] ss:$8 sps:$4 sm:$0xff]  }
 0x384   :  { %1147 = vmatpush1.bf16.msra.mxu0 %v1544_v23  ;;  %v1565_v39 = vld [vmem:[#allocation3 + $0xf0] ss:$8 sps:$4 sm:$0xff]   ;;  %v1566_v40 = vld [vmem:[#allocation3 + $0xe4] ss:$8 sps:$4 sm:$0xff]   ;;  %v1568_v43 = vld [vmem:[#allocation3 + $0xe0] ss:$8 sps:$4 sm:$0xff]  }
 0x385   :  { %1148 = vmatprep.subr.bf16.mxu0 %v1545_v24  ;;  %v1569_v44 = vld [vmem:[#allocation3 + $0xd4] ss:$8 sps:$4 sm:$0xff]   ;;  %v1571_v45 = vld [vmem:[#allocation3 + $0xd0] ss:$8 sps:$4 sm:$0xff]   ;;  %v1572_v46 = vld [vmem:[#allocation3 + $0xc4] ss:$8 sps:$4 sm:$0xff]  }
 0x386   :  { %v1574_v47 = vld [vmem:[#allocation3 + $0xc0] ss:$8 sps:$4 sm:$0xff]   ;;  %v1575_v48 = vld [vmem:[#allocation3 + $0xb4] ss:$8 sps:$4 sm:$0xff]   ;;  %v1577_v49 = vld [vmem:[#allocation3 + $0xb0] ss:$8 sps:$4 sm:$0xff]  }
 0x387   :  { %v1578_v50 = vld [vmem:[#allocation3 + $0xa4] ss:$8 sps:$4 sm:$0xff]   ;;  %v1580_v51 = vld [vmem:[#allocation3 + $0xa0] ss:$8 sps:$4 sm:$0xff]   ;;  %v1581_v52 = vld [vmem:[#allocation3 + $0x94] ss:$8 sps:$4 sm:$0xff]  }
 0x388   :  { %1149 = vmatpush1.bf16.msra.mxu0 %v1547_v25  ;;  %v1583_v32 = vld [vmem:[#allocation3 + $0x90] ss:$8 sps:$4 sm:$0xff]   ;;  %v1584_v53 = vld [vmem:[#allocation3 + $0x84] ss:$8 sps:$4 sm:$0xff]   ;;  %v1586_v54 = vld [vmem:[#allocation3 + $0x80] ss:$8 sps:$4 sm:$0xff]  }
 0x389   :  { %1150 = vmatprep.subr.bf16.mxu0 %v1548_v26  ;;  %v972_v55 = vld [vmem:[%s1824_s6] sm:$0x3]  ;;  %vm1233_vm1 = vcmask 1024  }
 0x38a   :  { %v977_v56 = vrot.slane %v972_v55, %v1742_v42  ;;  %v981_v57 = vrot.slane %v972_v55, %v1740_v41  ;;  %v1211_v19 = vld [vmem:[%s1825_s7] sm:$0x3] }
 0x38b   :  { %v1216_v22 = vrot.slane %v1211_v19, %v1742_v42  ;;  %v1220_v23 = vrot.slane %v1211_v19, %v1740_v41 }
 0x38c   :  { %1151 = vmatpush1.bf16.msra.mxu0 %v1550_v27 }
 0x38d   :  { %1152 = vmatprep.subr.bf16.mxu0 %v1551_v28 }
 0x390   :  { %1153 = vmatpush1.bf16.msra.mxu0 %v1553_v29 }
 0x391   :  { %1154 = vmatprep.subr.bf16.mxu0 %v1554_v30 }
 0x394   :  { %1155 = vmatpush1.bf16.msra.mxu0 %v1556_v31 }
 0x395   :  { %1156 = vmatprep.subr.bf16.mxu0 %v1557_v33  ;;  %v1231_v33 = vstv %s1826_s8 }
 0x398   :  { %1157 = vmatpush1.bf16.msra.mxu0 %v1559_v35 }
 0x399   :  { %1158 = vmatprep.subr.bf16.mxu0 %v1560_v36 }
 0x39c   :  { %1159 = vmatpush1.bf16.msra.mxu0 %v1562_v37 }
 0x39d   :  { %1160 = vmatprep.subr.bf16.mxu0 %v1563_v38 }
 0x3a0   :  { %1161 = vmatpush2.bf16.msra.mxu0 %v1565_v39 }
 0x3a1   :  { %1162 = vmatprep.subr.bf16.mxu0 %v1566_v40 }
 0x3a4   :  { %1163 = vmatpush2.bf16.msra.mxu0 %v1568_v43 }
 0x3a5   :  { %1164 = vmatprep.subr.bf16.mxu0 %v1569_v44 }
 0x3a8   :  { %1165 = vmatpush2.bf16.msra.mxu0 %v1571_v45 }
 0x3a9   :  { %1166 = vmatprep.subr.bf16.mxu0 %v1572_v46 }
 0x3ac   :  { %1167 = vmatpush2.bf16.msra.mxu0 %v1574_v47 }
 0x3ad   :  { %1168 = vmatprep.subr.bf16.mxu0 %v1575_v48 }
 0x3b0   :  { %1169 = vmatpush2.bf16.msra.mxu0 %v1577_v49 }
 0x3b1   :  { %1170 = vmatprep.subr.bf16.mxu0 %v1578_v50 }
 0x3b4   :  { %1171 = vmatpush2.bf16.msra.mxu0 %v1580_v51 }
 0x3b5   :  { %1172 = vmatprep.subr.bf16.mxu0 %v1581_v52 }
 0x3b8   :  { %1173 = vmatpush2.bf16.msra.mxu0 %v1583_v32 }
 0x3b9   :  { %1174 = vmatprep.subr.bf16.mxu0 %v1584_v53 }
 0x3bc   :  { %1175 = vmatpush2.bf16.msra.mxu0 %v1586_v54 }
 0x3bf   :  { %1177 = vmatmul.mubr.bf16.vlgmr.msra.gmra.mxu0 %v938_v34 }
 0x47f   :  { %v1178_v58 = vpop.f32.mrf.mxu0 }
 0x480   :  { %v1179_v59 = vadd.f32 %v1178_v58, %v977_v56 }
 0x481   :  { %v1180_v60 = vpop.f32.mrf.mxu0 }
 0x482   :  { %v1185_v61 = vmul.f32 0.2, %v1179_v59  ;;  %v1181_v62 = vadd.f32 %v1180_v60, %v981_v57 }
 0x483   :  { %v1182_v63 = vpop.f32.mrf.mxu0 }
 0x484   :  { %v1187_v0 = vmax.f32 %v1179_v59, %v1185_v61  ;;  %v1186_v1 = vmul.f32 0.2, %v1181_v62 }
 0x485   :  { %v1183_v2 = vpop.f32.mrf.mxu0 }
 0x486   :  { %v1188_v3 = vmax.f32 %v1181_v62, %v1186_v1  ;;  %v1189_v4 = vsel %vm385_vm0, %v1187_v0, 0.0  ;;  %v1195_v6 = vmul.f32 %v1187_v0, %v1187_v0 }
 0x488   :  { %v1190_v5 = vsel %vm385_vm0, %v1188_v3, 0.0  ;;  %v1196_v7 = vmul.f32 %v1188_v3, %v1188_v3  ;;  %v1197_v10 = vsel %vm385_vm0, %v1195_v6, 0.0 }
 0x489   :  { %v1191_v8 = vadd.f32 %v1190_v5, %v1189_v4 }
 0x48a   :  { %v1198_v9 = vsel %vm385_vm0, %v1196_v7, 0.0 }
 0x48b   :  { %1192 = vadd.xlane.f32.xlu0 %v1191_v8  ;;  %v1199_v11 = vadd.f32 %v1198_v9, %v1197_v10 }
 0x48f   :  { %1200 = vadd.xlane.f32.xlu0 %v1199_v11 }
 0x514   :  { %v1193_v12 = vpop.xlane.xlu0 %1192 }
 0x515   :  { %v1194_v13 = vmul.f32 0.00390625, %v1193_v12 }
 0x517   :  { %v1203_v15 = vmul.f32 %v1194_v13, %v1194_v13  ;;  %v1205_v20 = vsub.f32 %v1187_v0, %v1194_v13  ;;  %v1206_v21 = vsub.f32 %v1188_v3, %v1194_v13 }
 0x518   :  { %v1201_v14 = vpop.xlane.xlu0 %1200 }
 0x519   :  { %v1202_v16 = vmul.f32 0.00390625, %v1201_v14 }
 0x51b   :  { %v1204_v17 = vsub.f32 %v1202_v16, %v1203_v15 }
 0x51d   :  { %v1207_v18 = vadd.f32 1e-05, %v1204_v17 }
 0x51f   :  { %1587 = vrsqrt.f32 %v1207_v18 }
 0x52c   :  { %v1588_v24 = vpop.eup %1587 }
 0x52d   :  { %v1209_v25 = vmul.f32 %v1588_v24, %v1205_v20  ;;  %v1210_v26 = vmul.f32 %v1588_v24, %v1206_v21 }
 0x52f   :  { %v1223_v27 = vmul.f32 %v1216_v22, %v1209_v25  ;;  %v1224_v28 = vmul.f32 %v1220_v23, %v1210_v26 }
 0x531   :  { %v1225_v29 = vsel %vm385_vm0, %v1223_v27, 0.0  ;;  %v1226_v30 = vsel %vm385_vm0, %v1224_v28, 0.0 }
 0x532   :  { %v1227_v31 = vadd.f32 %v1226_v30, %v1225_v29 }
 0x534   :  { %1228 = vadd.xlane.f32.xlu1 %v1227_v31 }
 0x5bd   :  { %v1229_v35 = vpop.xlane.xlu1 %1228 }
 0x5be   :  { %v1232_v42 = vadd.f32 %v1231_v33, %v1229_v35 }
 0x5c0   :  { %1234 = vst.msk [vmem:[%s1827_s9] sm:$0x3] %vm1233_vm1, %v1232_v42 }
 0x5c1   :  { %1239 = vsyncpa [#allocation7], 1 }
 0x5c2   :  { %1240 = vsyncpa [#allocation9], 1 }
 0x5c3   :  { %1241 = vsyncmov [#allocation4] }
 0x5c6   :  { %s1242_s14 = vpop.sfrf %1241 }
 0x5c7   :  { %p1382_p6 = scmp.ne.s32.totalorder %s1242_s14, 0 }
 0x5c9   :  { %1246 = shalt.err (%p1382_p6)  }
 0x5ca   :  { %1248 = vsyncmov [#allocation4 + $0x1] }
 0x5cd   :  { %s1249_s15 = vpop.sfrf %1248 }
 0x5ce   :  { %p1383_p7 = scmp.ne.s32.totalorder %s1249_s15, 0 }
 0x5d0   :  { %1253 = shalt.err (%p1383_p7)  }

</bundles_post_ra>
